<compile_context>
chip_gen: v7x
topology: tpu7x:2x2x1
jax: 0.10.0
libtpu: 0.0.40
codegen_flags: <defaults>
</compile_context>

<pallas_src>
import functools

import jax
import jax.numpy as jnp
from jax.experimental import pallas as pl
from jax.experimental.pallas import tpu as pltpu


def _round_up(x, m):
    return -(-x // m) * m


def _top_p_gate_kernel(x_ref, w_ref, out_ref, *, top_p_threshold, probs_dtype,
                       approx_reciprocal):
    # x_ref: [tm, H], w_ref: [H, E], out_ref: [tm, E_pad]
    x = x_ref[...]
    w = w_ref[...]

    # nn.Linear(hidden, E, bias=False): logits = x @ W^T  (W pre-transposed).
    logits = jnp.dot(x, w, preferred_element_type=jnp.float32)        # [tm, E] f32

    # F.softmax(logits.float(), dim=1) -- all math in f32.
    m = jnp.max(logits, axis=-1, keepdims=True)
    e = jnp.exp(logits - m)
    denom = jnp.sum(e, axis=-1, keepdims=True)
    probs_f32 = e * pl.reciprocal(denom, approx=approx_reciprocal)    # [tm, E]

    # Reference casts probs back to the logits dtype before the top-p selection;
    # replicate that rounding, then upcast to f32 so every element-wise op below
    # runs on the native-width VPU path (v5e has no bf16 VALU).
    probs = probs_f32.astype(probs_dtype).astype(jnp.float32)         # [tm, E]

    tm, num_experts = probs.shape

    # Sort-free top-p: expert i is KEPT iff the sum of probabilities of experts
    # strictly "ahead" of it in a stable descending sort is <= threshold.
    # One broadcasted [tm, E, E] compare + one lane reduction; the tie-break
    # mask is a single [1, E, E] constant broadcast over tokens.
    p_i = probs[:, :, None]                                           # [tm, E, 1]
    p_j = probs[:, None, :]                                           # [tm, 1, E]
    i_idx = jax.lax.broadcasted_iota(jnp.int32, (1, num_experts, num_experts), 1)
    j_idx = jax.lax.broadcasted_iota(jnp.int32, (1, num_experts, num_experts), 2)
    tie_ahead = j_idx < i_idx                                         # [1, E, E]
    ahead = (p_j > p_i) | ((p_j == p_i) & tie_ahead)                  # [tm, E, E]
    cumsum_excl = jnp.sum(jnp.where(ahead, p_j, 0.0), axis=-1)        # [tm, E]
    keep = cumsum_excl <= jnp.float32(top_p_threshold)

    # logits_score = 1 + probs - probs.detach()  ->  numerically (1 + p) - p.
    score = (1.0 + probs) - probs
    result = jnp.where(keep, score, 0.0)                              # [tm, E]

    # Lane-dense store: pad the expert axis up to the 128-aligned output block
    # width so the epilogue is unmasked full-width stores; wrapper slices [:, :E].
    e_pad = out_ref.shape[-1]
    if e_pad != num_experts:
        result = jnp.concatenate(
            [result, jnp.zeros((tm, e_pad - num_experts), jnp.float32)], axis=-1)
    out_ref[...] = result.astype(out_ref.dtype)


def _vmem_budget_bytes():
    # ~70% of physical VMEM (v5e/v6e: 128 MiB, v7x: 64 MiB per TensorCore).
    try:
        phys = int(pltpu.get_tpu_info().vmem_capacity_bytes)
    except Exception:
        phys = 64 * 1024 * 1024   # conservative default (v7x per-core VMEM)
    return max(16 * 1024 * 1024, int(phys * 0.7))


def _auto_block_rows(requested, n_rows, H, E, E_pad, x_item, w_item, o_item, budget):
    """Largest 8-aligned token tile whose live set fits the VMEM budget."""
    e8 = _round_up(E, 8)
    e_lane = _round_up(E, 128)
    per_row = (2 * H * x_item            # double-buffered activation tile
               + 2 * E_pad * o_item      # double-buffered output tile
               + 3 * e8 * e_lane * 4     # lane-padded f32 [E, E] compare temporaries
               + 16 * e_lane * 4)        # logits / softmax / score temporaries
    fixed = 2 * H * E * w_item + (2 << 20)   # weight buffers + fixed slack
    tm = max(8, (budget - fixed) // per_row)
    tm = min(tm, max(8, int(requested)), n_rows)
    tm = max(8, (tm // 8) * 8)
    # Keep >= 2 grid steps so both v7x TensorCores get work (harmless on 1-TC chips).
    if n_rows > 8 and -(-n_rows // tm) < 2:
        tm = max(8, _round_up(-(-n_rows // 2), 8))
    return tm


def top_p_gate(routing_inputs, w_logits, top_p_threshold, *,
               block_rows=1024, compute_dtype=jnp.bfloat16,
               approx_reciprocal=True):
    """Forward of TopPGate (static=False, eval mode). Returns (None, expert_weights).

    routing_inputs: [N, H]; w_logits: [E, H] (PyTorch nn.Linear weight layout).
    compute_dtype: dtype used to stream x / W through the MXU (the gate is
      HBM-bound, so bf16 roughly halves wall-clock). Logits, softmax, the top-p
      cumulative sum and the final score always run in f32; the softmax probs
      are rounded to routing_inputs.dtype to mirror the reference's
      `.to(logits.dtype)` cast. Pass None to stream in the input dtype.
      Call under jax.jit so the streaming cast / weight transpose fuse with the
      producer instead of costing an extra HBM round trip.
    approx_reciprocal: EUP approximate reciprocal for the softmax denominator
      (recommended). Pass False for bit-parity with exact division right at the
      keep/drop boundary.
    """
    N, H = routing_inputs.shape
    E = w_logits.shape[0]
    out_dtype = routing_inputs.dtype
    E_pad = _round_up(E, 128)

    x = routing_inputs
    w_t = jnp.transpose(w_logits)                      # [H, E]
    if compute_dtype is not None:
        x = x.astype(compute_dtype)
        w_t = w_t.astype(compute_dtype)

    x_item = jnp.dtype(x.dtype).itemsize
    w_item = jnp.dtype(w_t.dtype).itemsize
    o_item = jnp.dtype(out_dtype).itemsize

    # Pad the token axis only up to a sublane multiple (usually a no-op); the
    # last grid step may be a partial block -- no full [N, H] HBM copy.
    n_rows = _round_up(N, 8)
    if n_rows != N:
        x = jnp.pad(x, ((0, n_rows - N), (0, 0)))

    budget = _vmem_budget_bytes()
    tm = _auto_block_rows(block_rows, n_rows, H, E, E_pad,
                          x_item, w_item, o_item, budget)
    grid = (pl.cdiv(n_rows, tm),)

    kernel = functools.partial(
        _top_p_gate_kernel,
        top_p_threshold=float(top_p_threshold),
        probs_dtype=out_dtype,
        approx_reciprocal=bool(approx_reciprocal),
    )

    cost = pl.CostEstimate(
        flops=2 * n_rows * H * E + 4 * n_rows * E * E,
        transcendentals=n_rows * E,
        bytes_accessed=n_rows * H * x_item + H * E * w_item + n_rows * E_pad * o_item,
    )
    cparams = pltpu.CompilerParams(
        dimension_semantics=("parallel",),   # token axis shards across TCs (megacore)
        vmem_limit_bytes=budget,
    )

    # TODO(synk): on v5e/v6e (128 MiB VMEM) a 3-deep activation pipeline
    # (pipeline_mode=pl.Buffered(3)) would hide DMA jitter; default 2-deep kept
    # here for a single portable code path.
    gate = pl.pallas_call(
        kernel,
        out_shape=jax.ShapeDtypeStruct((n_rows, E_pad), out_dtype),
        grid_spec=pltpu.PrefetchScalarGridSpec(
            num_scalar_prefetch=0,
            grid=grid,
            in_specs=[
                pl.BlockSpec((tm, H), lambda i: (i, 0)),
                # Grid-invariant weight tile: same block index every step, so it
                # is only DMA'd once.
                pl.BlockSpec((H, E), lambda i: (0, 0)),
            ],
            out_specs=pl.BlockSpec((tm, E_pad), lambda i: (i, 0)),
        ),
        compiler_params=cparams,
        cost_estimate=cost,
    )
    expert_weights = gate(x, w_t)[:N, :E]

    # TODO(synk): training-only balance/entropy regularization losses and the
    # straight-through gradient of `1 + logits - logits.detach()` are autograd
    # semantics, out of scope for this forward-only kernel.
    # TODO(synk): for E >= 64 the [tm, E, E] compare uses only E of 128 lanes;
    # a lane-dense [E, E, tm] layout would remove that VPU/XLU ceiling.
    output = None
    return output, expert_weights


def top_p_gate_ref(routing_inputs, w_logits, top_p_threshold):
    """Pure-JAX replica of the PyTorch reference (sort/cumsum/scatter path)."""
    logits = routing_inputs @ w_logits.T
    probs = jax.nn.softmax(logits.astype(jnp.float32), axis=1).astype(logits.dtype)
    order = jnp.argsort(-probs, axis=-1)  # stable descending (index tie-break)
    sorted_probs = jnp.take_along_axis(probs, order, axis=-1)
    cum = jnp.cumsum(sorted_probs, axis=-1)
    mask = cum > top_p_threshold
    thr = jnp.argmax(mask.astype(jnp.int32), axis=-1)
    thr_mask = jax.nn.one_hot(thr, probs.shape[-1], dtype=jnp.bool_)
    mask = mask & ~thr_mask
    inv_order = jnp.argsort(order, axis=-1)
    mask_orig = jnp.take_along_axis(mask.astype(probs.dtype), inv_order, axis=-1)
    score = (1.0 + probs) - probs
    expert_weights = jnp.where(mask_orig == 1.0, 0.0, score)
    return None, expert_weights


if __name__ == "__main__":
    N, H, E = 16, 32, 8     # tokens, hidden_size, num_experts
    TOP_P = 0.5

    key = jax.random.PRNGKey(0)
    kx, kw = jax.random.split(key)

    # nn.Linear(H, E, bias=False) weight [E, H] ~ N(0, 0.001) per module __init__.
    w_logits = 0.001 * jax.random.normal(kw, (E, H), dtype=jnp.float32)
    # routing inputs scaled so the softmax is not degenerate with std=0.001 weights
    routing_inputs = 100.0 * jax.random.normal(kx, (N, H), dtype=jnp.float32)

    # Strict check: f32 streaming + exact reciprocal so the comparison against
    # the exact-division reference cannot flip a keep/drop at the top-p boundary.
    _, ew = top_p_gate(routing_inputs, w_logits, TOP_P,
                       compute_dtype=None, approx_reciprocal=False)
    ew = jax.block_until_ready(ew)

    _, ew_ref = top_p_gate_ref(routing_inputs, w_logits, TOP_P)
    assert ew.shape == (N, E)
    assert jnp.allclose(ew, jnp.asarray(ew_ref), atol=1e-6), (ew, ew_ref)

    # Recommended production configuration (defaults): bf16 MXU streaming +
    # approximate EUP reciprocal. Keep/drop decisions may legitimately differ
    # for tokens whose cumulative probability sits within ~1 ulp of top_p.
    _, ew_fast = top_p_gate(routing_inputs, w_logits, TOP_P)
    ew_fast = jax.block_until_ready(ew_fast)
    assert ew_fast.shape == (N, E)

    print("KERNEL_OK")
</pallas_src>

<mosaic_0001>
module attributes {stable_mosaic.version = 11 : i64} {
  func.func @_top_p_gate_kernel(%arg0: i32, %arg1: memref<8x32xf32, #tpu.memory_space<vmem>>, %arg2: memref<32x8xf32, #tpu.memory_space<vmem>>, %arg3: memref<8x128xf32, #tpu.memory_space<vmem>>) attributes {dimension_semantics = [#tpu.dimension_semantics<parallel>], iteration_bounds = array<i64: 2>, scalar_prefetch = 0 : i64, scratch_operands = 0 : i64, tpu.core_type = #tpu.core_type<tc>, window_params = [{transform_indices = @transform_0, window_bounds = array<i64: 8, 32>}, {pipeline_mode = #tpu.pipeline_mode<synchronous>, transform_indices = @transform_1, window_bounds = array<i64: 32, 8>}, {transform_indices = @transform_2, window_bounds = array<i64: 8, 128>}]} {
    %c0 = arith.constant 0 : index
    %c0_0 = arith.constant 0 : index
    %0 = vector.load %arg1[%c0, %c0_0] : memref<8x32xf32, #tpu.memory_space<vmem>>, vector<8x32xf32>
    %c0_1 = arith.constant 0 : index
    %c0_2 = arith.constant 0 : index
    %1 = vector.load %arg2[%c0_1, %c0_2] : memref<32x8xf32, #tpu.memory_space<vmem>>, vector<32x8xf32>
    %cst = arith.constant dense<0.000000e+00> : vector<8x8xf32>
    %2 = tpu.matmul %0, %1, %cst {dimension_numbers = #tpu.dot_dimension_numbers<[1], [0], [0], [1], [0, 0, 1, 1], [], []>} : vector<8x32xf32>, vector<32x8xf32>, vector<8x8xf32> -> vector<8x8xf32>
    %cst_3 = arith.constant dense<0xFF800000> : vector<8xf32>
    %3 = vector.multi_reduction <maximumf>, %2, %cst_3 [1] : vector<8x8xf32> to vector<8xf32>
    %4 = vector.shape_cast %3 : vector<8xf32> to vector<8x1xf32>
    %5 = vector.broadcast %4 : vector<8x1xf32> to vector<8x8xf32>
    %6 = arith.subf %2, %5 : vector<8x8xf32>
    %7 = math.exp %6 : vector<8x8xf32>
    %cst_4 = arith.constant dense<0.000000e+00> : vector<8xf32>
    %8 = vector.multi_reduction <add>, %7, %cst_4 [1] : vector<8x8xf32> to vector<8xf32>
    %9 = vector.shape_cast %8 : vector<8xf32> to vector<8x1xf32>
    %10 = tpu.reciprocal %9 : vector<8x1xf32> -> vector<8x1xf32>
    %11 = vector.broadcast %10 : vector<8x1xf32> to vector<8x8xf32>
    %12 = arith.mulf %7, %11 : vector<8x8xf32>
    %13 = vector.shape_cast %12 : vector<8x8xf32> to vector<8x8x1xf32>
    %14 = vector.shape_cast %12 : vector<8x8xf32> to vector<8x1x8xf32>
    %15 = tpu.iota {dimensions = array<i32: 1>} : vector<1x8x8xi32>
    %16 = tpu.iota {dimensions = array<i32: 2>} : vector<1x8x8xi32>
    %17 = arith.cmpi slt, %16, %15 : vector<1x8x8xi32>
    %18 = vector.broadcast %14 : vector<8x1x8xf32> to vector<8x8x8xf32>
    %19 = vector.broadcast %13 : vector<8x8x1xf32> to vector<8x8x8xf32>
    %20 = arith.cmpf ogt, %18, %19 : vector<8x8x8xf32>
    %21 = vector.broadcast %14 : vector<8x1x8xf32> to vector<8x8x8xf32>
    %22 = vector.broadcast %13 : vector<8x8x1xf32> to vector<8x8x8xf32>
    %23 = arith.cmpf oeq, %21, %22 : vector<8x8x8xf32>
    %24 = vector.broadcast %17 : vector<1x8x8xi1> to vector<8x8x8xi1>
    %25 = arith.andi %23, %24 : vector<8x8x8xi1>
    %26 = arith.ori %20, %25 : vector<8x8x8xi1>
    %cst_5 = arith.constant 0.000000e+00 : f32
    %27 = vector.shape_cast %14 : vector<8x1x8xf32> to vector<8x1x8xf32>
    %28 = vector.broadcast %27 : vector<8x1x8xf32> to vector<8x8x8xf32>
    %29 = vector.broadcast %cst_5 : f32 to vector<8x8x8xf32>
    %30 = arith.select %26, %28, %29 : vector<8x8x8xi1>, vector<8x8x8xf32>
    %cst_6 = arith.constant dense<0.000000e+00> : vector<8x8xf32>
    %31 = vector.multi_reduction <add>, %30, %cst_6 [2] : vector<8x8x8xf32> to vector<8x8xf32>
    %cst_7 = arith.constant 5.000000e-01 : f32
    %32 = vector.broadcast %cst_7 : f32 to vector<8x8xf32>
    %33 = arith.cmpf ole, %31, %32 : vector<8x8xf32>
    %cst_8 = arith.constant 1.000000e+00 : f32
    %34 = vector.broadcast %cst_8 : f32 to vector<8x8xf32>
    %35 = arith.addf %34, %12 : vector<8x8xf32>
    %36 = arith.subf %35, %12 : vector<8x8xf32>
    %cst_9 = arith.constant 0.000000e+00 : f32
    %37 = vector.broadcast %cst_9 : f32 to vector<8x8xf32>
    %38 = arith.select %33, %36, %37 : vector<8x8xi1>, vector<8x8xf32>
    %cst_10 = arith.constant 0.000000e+00 : f32
    %39 = vector.broadcast %cst_10 : f32 to vector<8x120xf32>
    %40 = tpu.concatenate %38, %39 in 1 : vector<8x8xf32>, vector<8x120xf32> -> vector<8x128xf32>
    %c0_11 = arith.constant 0 : index
    %c0_12 = arith.constant 0 : index
    %41 = vector.load %arg3[%c0_11, %c0_12] : memref<8x128xf32, #tpu.memory_space<vmem>>, vector<8x128xf32>
    tpu.vector_store %arg3[%c0_11, %c0_12], %40 {strides = array<i32>} : memref<8x128xf32, #tpu.memory_space<vmem>>, vector<8x128xf32>,
    return
  }
  func.func @transform_0(%arg0: i32) -> (i32, i32) {
    %c0_i32 = arith.constant 0 : i32
    %c0_i32_0 = arith.constant 0 : i32
    return %arg0, %c0_i32 : i32, i32
  }
  func.func @transform_1(%arg0: i32) -> (i32, i32) {
    %c0_i32 = arith.constant 0 : i32
    %c0_i32_0 = arith.constant 0 : i32
    %c0_i32_1 = arith.constant 0 : i32
    return %c0_i32, %c0_i32_0 : i32, i32
  }
  func.func @transform_2(%arg0: i32) -> (i32, i32) {
    %c0_i32 = arith.constant 0 : i32
    %c0_i32_0 = arith.constant 0 : i32
    return %arg0, %c0_i32 : i32, i32
  }
}

</mosaic_0001>

<bundles_post_ra>
// kernel: tpu_custom_call.1
= control target key start
LH: loop header
LB: loop body
LE: loop exit
PB: predicated region body
PF: predicated region fallthrough
CT: control target
= control target key end

     0   :  { %7 = vsyncpa [#allocation3], 0  ;;  %s1054_s0 = inlined_call_operand.vmem [shape: f32[16,32], index: 0, kind: input, shape index: {}]   ;;  %s1055_s1 = inlined_call_operand.vmem [shape: f32[32,8], index: 1, kind: input, shape index: {}]   ;;  %s1056_s2 = inlined_call_operand.hbm [shape: f32[16,128], index: 2, kind: output, shape index: {}]  }
   0x1   :  { %9 = vsyncpa [#allocation3 + $0x1], 0  ;;  %s852_s9 = smov 0   ;;  %s854_s10 = smov 0  }
   0x2   :  { %s856_s11 = smov 0   ;;  %s858_s12 = smov 0  }
   0x3 LB: > { %s873_s13 = sadd.s32 4294967295, %s829_s12   ;;  %s684_s14 = sadd.s32 4294967294, %s829_s12   ;;  %s829_s12 = sphi %s858_s12, %s1066_s12   ;;  %s825_s11 = sphi %s856_s11, %s1065_s11   ;;  %s821_s10 = sphi %s854_s10, %s1064_s10   ;;  %s817_s9 = sphi %s852_s9, %s1063_s9  }
   0x4   : > { %s877_s15 = sadd.s32 1, %s829_s12   ;;  %s69_s16 = sadd.s32 1, %s825_s11 }
   0x5   : > { %s66_s17 = ssub.s32 %s829_s12, %s877_s15  ;;  %p79_p0 = scmp.ne.s32.totalorder %s825_s11, %s821_s10 }
   0x6   : > { %p67_p1 = scmp.eq.s32.totalorder %s66_s17, 0  ;;  %p80_p2 = scmp.eq.s32.totalorder %s873_s13, 1 }
   0x7   : > { %p85_p3 = scmp.ne.s32.totalorder %s821_s10, %s817_s9  ;;  %p86_p4 = scmp.eq.s32.totalorder %s684_s14, 1 }
   0x8   : > { %s888_s18 = scalar_select %p67_p1, %s825_s11, %s69_s16  }
   0x9   : > { %p890_p5 = por %p80_p2, %p79_p0  ;;  %p894_p6 = por %p86_p4, %p85_p3 }
   0xa   : > { %p687_p7 = scmp.ge.s32.totalorder %s829_s12, 1  ;;  %p114_p8 = scmp.lt.s32.totalorder %s829_s12, 3 }
   0xc   : > { %p115_p9 = pnand %p687_p7, %p114_p8 }
   0xd   : > { %v140_v0 = vld [vmem:[%s1055_s1] sm:$0xff] (!%p115_p9)  ;;  %v141_v1 = vld [vmem:[%s1055_s1 + $0x8] sm:$0xff] (!%p115_p9)  ;;  %v142_v2 = vld [vmem:[%s1055_s1 + $0x10] sm:$0xff] (!%p115_p9)  ;;  %v831_v3 = vmov (!%p115_p9), 0.0|0.0   ;;  %vm832_vm0 = vmmov (!%p115_p9), 0   ;;  %v833_v6 = vmov (!%p115_p9), 0.0   ;;  %v230_v17 = vlaneseq (!%p115_p9) }
   0xe   : > { %118 = sbr.rel (%p115_p9) target bundleno = 992 (0x3e0), region = 28  ;;  %711 = vmatprep.subr.bf16.mxu0 (!%p115_p9), %v831_v3  ;;  %v712_v4 = vpack.c.bf16 (!%p115_p9), %v141_v1, %v140_v0  ;;  %v143_v5 = vld [vmem:[%s1055_s1 + $0x18] sm:$0xff] (!%p115_p9)  ;;  %708 = vmatprep.mubr.msk.f32.mxu0 (!%p115_p9), %vm832_vm0, %v833_v6  ;;  %p135_p10 = scmp.lt.s32.totalorder (!%p115_p9), %s873_s13, 1  ;;  %vm144_vm1 = vcmask (!%p115_p9), 261120   ;;  %vm218_vm2 = vcmask (!%p115_p9), 64512  }
   0xf   : > { %v715_v7 = vpack.c.bf16 (!%p115_p9), %v143_v5, %v142_v2  ;;  %v919_v18 = vshrl.u32 (!%p115_p9), %v230_v17, 7  ;;  %v339_v19 = vand.u32 (!%p115_p9), 127, %v230_v17  ;;  %v834_v23 = vmov (!%p115_p9), 1966171168   ;;  %s132_s6 = sand.u32 (!%p115_p9), 1, %s821_s10   ;;  %s692_s8 = sshll.u32 (!%p115_p9), %s873_s13, 7 }
  0x10   : > { %713 = vmatpush3.bf16.msra.mxu0 (!%p115_p9), %v712_v4  ;;  %v289_v24 = vunpack.c.l.s4 (!%p115_p9), %v834_v23  ;;  %s688_s7 = sshll.u32 (!%p115_p9), %s132_s6, 3  ;;  %s1009_s22 = scalar_lea.hbm (!%p115_p9), %s1056_s2, %s692_s8 }
  0x11   : > { %714 = vmatprep.subr.bf16.mxu0 (!%p115_p9), %v831_v3  ;;  %vm922_vm3 = vcmp.lt.s32.totalorder (!%p115_p9), %v339_v19, %v919_v18  ;;  %v927_v21 = vsub.s32 (!%p115_p9), %v339_v19, %v919_v18  ;;  %v246_v26 = vsub.s32 (!%p115_p9), 2, %v919_v18  ;;  %v232_v27 = vsub.s32 (!%p115_p9), 0, %v919_v18  ;;  %s134_s14 = scalar_lea.vmem (!%p115_p9), [#allocation2], %s688_s7  ;;  %s836_s24 = smov (!%p115_p9), [#allocation2]  }
  0x12   : > { %v290_v25 = vunpack.c.0.s8 (!%p115_p9), %v289_v24  ;;  %v239_v34 = vsub.s32 (!%p115_p9), 1, %v919_v18  ;;  %v253_v37 = vsub.s32 (!%p115_p9), 3, %v919_v18  ;;  %v274_v41 = vsub.s32 (!%p115_p9), 6, %v919_v18  ;;  %s625_s16 = sshll.u32 (!%p115_p9), %s134_s14, 4  ;;  %s771_s25 = sshll.u32 (!%p115_p9), %s836_s24, 4  ;;  %s1011_s16 = int_to_ptr.vmem [resolvable:$true] %s625_s16  ;;  %s772_s25 = int_to_ptr.vmem [resolvable:$false] %s771_s25 }
  0x13   : > { %v281_v42 = vsub.s32 (!%p115_p9), 7, %v919_v18  ;;  %v260_v48 = vsub.s32 (!%p115_p9), 4, %v919_v18  ;;  %v267_v59 = vsub.s32 (!%p115_p9), 5, %v919_v18  ;;  %s767_s23 = scalar_lea.vmem (!%p115_p9), %s1011_s16, 128  ;;  %s773_s26 = scalar_lea.vmem (!%p115_p9), %s772_s25, 256 }
  0x14   : > { %716 = vmatpush3.bf16.msra.mxu0 (!%p115_p9), %v715_v7  ;;  %v293_v30 = vsub.s32 (!%p115_p9), %v290_v25, %v919_v18  ;;  %p768_p11 = scmp.ne.s32.totalorder (!%p115_p9), %s1011_s16, %s767_s23  ;;  %p774_p0 = scmp.lt.s32.totalorder (!%p115_p9), %s1011_s16, %s772_s25 }
  0x15   : > { %s136_s29 = scalar_select %p135_p10, %s873_s13, 1 }
  0x16   : > { %s612_s13 = scalar_lea.sflag [#allocation3], %s132_s6  ;;  %p769_p12 = pnand %p768_p11, %p890_p5 }
  0x17   : > { %s689_s30 = sshll.u32 %s136_s29, 3  ;;  %p775_p1 = scmp.lt.s32.totalorder %s773_s26, %s767_s23 }
  0x18   : > { %s138_s5 = scalar_lea.vmem %s1054_s0, %s689_s30  ;;  %p770_p13 = pneg %p769_p12 }
  0x19   : > { %v139_v8 = vld [vmem:[%s138_s5] sm:$0xff]  ;;  %p776_p2 = por %p775_p1, %p774_p0 }
  0x1a   : > { %709 = vmatmul.mubr.msk.f32.vlgmr.msra.gmra.mrb[0].mxu0 %vm144_vm1, %v139_v8 }
  0x1b   : > { %p777_p3 = pnand %p776_p2, %p770_p13 }
  0xed   : > { %v214_v9 = vpop.f32.mrb[0].mxu0 }
  0xee   : > { %v710_v10 = vpop.f32.mrb[1].mxu0  ;;  %v219_v11 = vsel %vm218_vm2, %v214_v9, -inf }
  0xef   : > { %220 = vmax.xlane.f32.xlu0 %v219_v11 }
 0x17c   : > { %v221_v12 = vpop.xlane.xlu0 %220 }
 0x17d   : > { %v222_v13 = vsub.f32 %v214_v9, %v221_v12 }
 0x17f   : > { %v223_v14 = vmul.f32 1.442695, %v222_v13 }
 0x181   : > { %763 = vpow2.f32 %v223_v14 }
 0x18b   : > { %v764_v15 = vpop.eup %763 }
 0x18c   : > { %v225_v16 = vsel %vm218_vm2, %v764_v15, 0.0 }
 0x18d   : > { %226 = vadd.xlane.f32.xlu0 %v225_v16 }
 0x21a   : > { %v227_v22 = vpop.xlane.xlu0 %226 }
 0x21b   : > { %765 = vrcp.f32 %v227_v22 }
 0x225   : > { %v766_v28 = vpop.eup %765 }
 0x226   : > { %v229_v29 = vmul.f32 %v766_v28, %v764_v15 }
 0x228   : > { %v247_v31 = vrot.slane %v229_v29, %v246_v26  ;;  %v233_v32 = vrot.slane %v229_v29, %v232_v27  ;;  %v455_v33 = vadd.f32 1.0, %v229_v29  ;;  %v294_v36 = vrot.slane %v229_v29, %v293_v30 }
 0x229   : > { %v287_v38 = vcombine.high %v229_v29, %v229_v29  ;;  %v240_v40 = vrot.slane %v229_v29, %v239_v34  ;;  %v254_v53 = vrot.slane %v229_v29, %v253_v37  ;;  %v261_v63 = vrot.slane %v229_v29, %v260_v48 }
 0x22a   : > { %249 = vbcast.lane.b32.xlu0 %v247_v31, 256  ;;  %235 = vbcast.lane.b32.xlu1 %v233_v32, 256  ;;  %v456_v35 = vsub.f32 %v455_v33, %v229_v29  ;;  %v310_v43 = vrot.slane %v294_v36, %v293_v30  ;;  %v302_v44 = vcombine.high %v294_v36, %v294_v36 }
 0x22b   : > { %v301_v45 = vrot.slane %v287_v38, %v293_v30  ;;  %v268_v6 = vrot.slane %v229_v29, %v267_v59  ;;  %v275_v7 = vrot.slane %v229_v29, %v274_v41  ;;  %v282_v8 = vrot.slane %v229_v29, %v281_v42 }
 0x22c   : > { %v461_v39 = vrot.slane %v456_v35, %v232_v27  ;;  %v936_v46 = vrot.slane %v456_v35, %v274_v41  ;;  %v938_v47 = vrot.slane %v456_v35, %v281_v42  ;;  %v332_v49 = vcombine.high %v310_v43, %v310_v43 }
 0x22d   : > { %v344_v50 = vrot.slane %v310_v43, %v232_v27  ;;  %v324_v51 = vrot.slane %v302_v44, %v293_v30  ;;  %v482_v52 = vrot.slane %v456_v35, %v253_v37  ;;  %v317_v54 = vrot.slane %v301_v45, %v293_v30 }
 0x22e   : > { %463 = vbcast.lane.b32.xlu0 %v461_v39, 256  ;;  %242 = vbcast.lane.b32.xlu1 %v240_v40, 256  ;;  %v303_v55 = vcombine.high %v301_v45, %v301_v45  ;;  %v352_v56 = vrot.slane %v332_v49, %v232_v27  ;;  %v496_v1 = vrot.slane %v456_v35, %v267_v59 }
 0x22f   : > { %v348_v57 = vrot.slane %v324_v51, %v232_v27  ;;  %v334_v58 = vcombine.high %v324_v51, %v324_v51  ;;  %v942_v60 = vrot.slane %v317_v54, %v232_v27  ;;  %v333_v62 = vcombine.high %v317_v54, %v317_v54 }
 0x230   : > { %v331_v61 = vrot.slane %v303_v55, %v293_v30  ;;  %v468_v9 = vrot.slane %v456_v35, %v239_v34  ;;  %v475_v10 = vrot.slane %v456_v35, %v246_v26  ;;  %v489_v11 = vrot.slane %v456_v35, %v260_v48 }
 0x231   : > { %v356_v0 = vrot.slane %v334_v58, %v232_v27  ;;  %v946_v3 = vrot.slane %v333_v62, %v232_v27  ;;  %v835_v34 = vmov 0  }
 0x232   : > { %484 = vbcast.lane.b32.xlu0 %v482_v52, 256  ;;  %256 = vbcast.lane.b32.xlu1 %v254_v53, 256  ;;  %v944_v2 = vrot.slane %v331_v61, %v232_v27  ;;  %v335_v4 = vcombine.high %v331_v61, %v331_v61 }
 0x233   : > { %761 = vset.pattern.permute.xlu1 %v835_v34  ;;  %762 = vset.pattern.permute.xlu0 %v835_v34 }
 0x234   : > { %v948_v5 = vrot.slane %v335_v4, %v232_v27 }
 0x236   : > { %498 = vbcast.lane.b32.xlu0 %v496_v1, 256  ;;  %263 = vbcast.lane.b32.xlu1 %v261_v63, 256 }
 0x23a   : > { %270 = vbcast.lane.b32.xlu1 %v268_v6, 256 }
 0x23e   : > { %277 = vbcast.lane.b32.xlu1 %v275_v7, 256 }
 0x242   : > { %284 = vbcast.lane.b32.xlu1 %v282_v8, 256 }
 0x246   : > { %470 = vbcast.lane.b32.xlu1 %v468_v9, 256 }
 0x24a   : > { %477 = vbcast.lane.b32.xlu1 %v475_v10, 256 }
 0x24e   : > { %491 = vbcast.lane.b32.xlu1 %v489_v11, 256 }
 0x29c   : > { %v250_v12 = vpop.permute.xlu0 %249  ;;  %v236_v13 = vpop.permute.xlu1 %235 }
 0x29d   : > { %vm391_vm4 = vcmp.eq.f32.partialorder %v352_v56, %v250_v12  ;;  %vm381_vm5 = vcmp.gt.f32.partialorder %v344_v50, %v236_v13  ;;  %vm389_vm6 = vcmp.eq.f32.partialorder %v344_v50, %v236_v13  ;;  %vm383_vm7 = vcmp.gt.f32.partialorder %v352_v56, %v250_v12 }
 0x29e   : > { %vm401_vm8 = vmand %vm391_vm4, %vm922_vm3 }
 0x29f   : > { %vm399_vm9 = vmand %vm389_vm6, %vm922_vm3 }
 0x2a0   : > { %v243_v14 = vpop.permute.xlu1 %242  ;;  %vm407_vm10 = vmor %vm381_vm5, %vm399_vm9  ;;  %v464_v41 = vpop.permute.xlu0 %463 }
 0x2a1   : > { %vm382_vm11 = vcmp.gt.f32.partialorder %v348_v57, %v243_v14  ;;  %vm390_vm12 = vcmp.eq.f32.partialorder %v348_v57, %v243_v14  ;;  %v415_v15 = vsel %vm407_vm10, %v344_v50, 0.0  ;;  %vm954_vm13 = vmor %vm383_vm7, %vm401_vm8 }
 0x2a2   : > { %vm400_vm14 = vmand %vm390_vm12, %vm922_vm3  ;;  %v423_v17 = vsel %vm218_vm2, %v415_v15, 0.0  ;;  %v417_v18 = vsel %vm954_vm13, %v352_v56, 0.0 }
 0x2a3   : > { %424 = vadd.xlane.f32.xlu1 %v423_v17  ;;  %vm408_vm15 = vmor %vm382_vm11, %vm400_vm14  ;;  %v429_v26 = vsel %vm218_vm2, %v417_v18, 0.0 }
 0x2a4   : > { %v257_v19 = vpop.permute.xlu1 %256  ;;  %v416_v22 = vsel %vm408_vm15, %v348_v57, 0.0  ;;  %v485_v43 = vpop.permute.xlu0 %484 }
 0x2a5   : > { %vm384_vm0 = vcmp.gt.f32.partialorder %v356_v0, %v257_v19  ;;  %vm392_vm1 = vcmp.eq.f32.partialorder %v356_v0, %v257_v19  ;;  %v426_v23 = vsel %vm218_vm2, %v416_v22, 0.0 }
 0x2a6   : > { %vm402_vm4 = vmand %vm392_vm1, %vm922_vm3  ;;  %427 = vadd.xlane.f32.xlu0 %v426_v23 }
 0x2a7   : > { %vm410_vm5 = vmor %vm384_vm0, %vm402_vm4 }
 0x2a8   : > { %v264_v24 = vpop.permute.xlu1 %263  ;;  %v418_v25 = vsel %vm410_vm5, %v356_v0, 0.0  ;;  %v499_v45 = vpop.permute.xlu0 %498 }
 0x2a9   : > { %vm385_vm6 = vcmp.gt.f32.partialorder %v942_v60, %v264_v24  ;;  %vm393_vm7 = vcmp.eq.f32.partialorder %v942_v60, %v264_v24  ;;  %v432_v27 = vsel %vm218_vm2, %v418_v25, 0.0 }
 0x2aa   : > { %vm403_vm8 = vmand %vm393_vm7, %vm922_vm3  ;;  %430 = vadd.xlane.f32.xlu0 %v429_v26  ;;  %433 = vadd.xlane.f32.xlu1 %v432_v27 }
 0x2ab   : > { %vm411_vm9 = vmor %vm385_vm6, %vm403_vm8 }
 0x2ac   : > { %v271_v28 = vpop.permute.xlu1 %270  ;;  %v419_v29 = vsel %vm411_vm9, %v942_v60, 0.0 }
 0x2ad   : > { %vm386_vm10 = vcmp.gt.f32.partialorder %v944_v2, %v271_v28  ;;  %vm394_vm11 = vcmp.eq.f32.partialorder %v944_v2, %v271_v28  ;;  %v435_v30 = vsel %vm218_vm2, %v419_v29, 0.0 }
 0x2ae   : > { %vm404_vm12 = vmand %vm394_vm11, %vm922_vm3  ;;  %436 = vadd.xlane.f32.xlu0 %v435_v30 }
 0x2af   : > { %vm412_vm13 = vmor %vm386_vm10, %vm404_vm12 }
 0x2b0   : > { %v278_v31 = vpop.permute.xlu1 %277  ;;  %v420_v32 = vsel %vm412_vm13, %v944_v2, 0.0 }
 0x2b1   : > { %vm387_vm14 = vcmp.gt.f32.partialorder %v946_v3, %v278_v31  ;;  %vm395_vm15 = vcmp.eq.f32.partialorder %v946_v3, %v278_v31  ;;  %v438_v33 = vsel %vm218_vm2, %v420_v32, 0.0 }
 0x2b2   : > { %vm405_vm0 = vmand %vm395_vm15, %vm922_vm3  ;;  %439 = vadd.xlane.f32.xlu1 %v438_v33  ;;  %vm594_vm15 = vcmask 1041409  }
 0x2b3   : > { %vm413_vm1 = vmor %vm387_vm14, %vm405_vm0  ;;  %vm596_vm0 = vcmask 1042434  }
 0x2b4   : > { %v285_v35 = vpop.permute.xlu1 %284  ;;  %v421_v36 = vsel %vm413_vm1, %v946_v3, 0.0  ;;  %vm598_vm1 = vcmask 1043459  }
 0x2b5   : > { %vm388_vm4 = vcmp.gt.f32.partialorder %v948_v5, %v285_v35  ;;  %vm396_vm5 = vcmp.eq.f32.partialorder %v948_v5, %v285_v35  ;;  %v441_v37 = vsel %vm218_vm2, %v421_v36, 0.0 }
 0x2b6   : > { %vm406_vm6 = vmand %vm396_vm5, %vm922_vm3  ;;  %442 = vadd.xlane.f32.xlu0 %v441_v37  ;;  %vm602_vm5 = vcmask 1045509  }
 0x2b7   : > { %vm414_vm7 = vmor %vm388_vm4, %vm406_vm6  ;;  %vm600_vm4 = vcmask 1044484   ;;  %vm604_vm6 = vcmask 1046534  }
 0x2b8   : > { %v422_v38 = vsel %vm414_vm7, %v948_v5, 0.0  ;;  %v471_v40 = vpop.permute.xlu1 %470  ;;  %vm606_vm7 = vcmask 1047559  }
 0x2b9   : > { %v444_v39 = vsel %vm218_vm2, %v422_v38, 0.0 }
 0x2ba   : > { %445 = vadd.xlane.f32.xlu1 %v444_v39 }
 0x2bc   : > { %v478_v42 = vpop.permute.xlu1 %477 }
 0x2c0   : > { %v492_v44 = vpop.permute.xlu1 %491 }
 0x2cb   : > { %505 = vbcast.lane.b32.xlu1 %v936_v46, 256 }
 0x2cc   : > { %512 = vbcast.lane.b32.xlu0 %v938_v47, 256 }
 0x330   : > { %v425_v48 = vpop.xlane.xlu1 %424 }
 0x331   : > { %vm447_vm8 = vcmp.le.f32.partialorder %v425_v48, 0.5 }
 0x332   : > { %v522_v20 = vsel %vm447_vm8, %v464_v41, 0.0 }
 0x333   : > { %539 = vperm.xlu1 %761, %v522_v20   ;;  %v428_v49 = vpop.xlane.xlu0 %427 }
 0x334   : > { %vm448_vm3 = vcmp.le.f32.partialorder %v428_v49, 0.5 }
 0x335   : > { %v523_v50 = vsel %vm448_vm3, %v471_v40, 0.0 }
 0x336   : > { %542 = vperm.xlu0 %762, %v523_v50  }
 0x337   : > { %v431_v51 = vpop.xlane.xlu0 %430  ;;  %v434_v52 = vpop.xlane.xlu1 %433 }
 0x338   : > { %vm449_vm9 = vcmp.le.f32.partialorder %v431_v51, 0.5  ;;  %vm450_vm10 = vcmp.le.f32.partialorder %v434_v52, 0.5 }
 0x339   : > { %v524_v46 = vsel %vm449_vm9, %v478_v42, 0.0  ;;  %v525_v53 = vsel %vm450_vm10, %v485_v43, 0.0 }
 0x33a   : > { %545 = vperm.xlu1 %761, %v524_v46  }
 0x33b   : > { %v437_v47 = vpop.xlane.xlu0 %436 }
 0x33c   : > { %vm451_vm11 = vcmp.le.f32.partialorder %v437_v47, 0.5 }
 0x33d   : > { %v526_v54 = vsel %vm451_vm11, %v492_v44, 0.0 }
 0x33e   : > { %551 = vperm.xlu0 %762, %v526_v54   ;;  %548 = vperm.xlu1 %761, %v525_v53  }
 0x33f   : > { %v440_v55 = vpop.xlane.xlu1 %439 }
 0x340   : > { %vm452_vm12 = vcmp.le.f32.partialorder %v440_v55, 0.5 }
 0x341   : > { %v527_v56 = vsel %vm452_vm12, %v499_v45, 0.0 }
 0x342   : > { %554 = vperm.xlu1 %761, %v527_v56  }
 0x343   : > { %v443_v57 = vpop.xlane.xlu0 %442 }
 0x344   : > { %vm453_vm14 = vcmp.le.f32.partialorder %v443_v57, 0.5 }
 0x347   : > { %v513_v58 = vpop.permute.xlu0 %512  ;;  %v446_v59 = vpop.xlane.xlu1 %445 }
 0x348   : > { %vm454_vm13 = vcmp.le.f32.partialorder %v446_v59, 0.5 }
 0x349   : > { %v529_v60 = vsel %vm454_vm13, %v513_v58, 0.0 }
 0x34a   : > { %560 = vperm.xlu1 %761, %v529_v60  }
 0x34b   : > { %v506_v61 = vpop.permute.xlu1 %505 }
 0x34c   : > { %v528_v62 = vsel %vm453_vm14, %v506_v61, 0.0 }
 0x34d   : > { %557 = vperm.xlu0 %762, %v528_v62  }
 0x3b2   : > { %v540_v63 = vpop.permute.xlu1 %539 }
 0x3b3   : > { %v565_v5 = vrot.slane %v540_v63, %v927_v21 }
 0x3b5   : > { %v543_v1 = vpop.permute.xlu0 %542 }
 0x3b6   : > { %v569_v3 = vrot.slane %v543_v1, %v927_v21 }
 0x3b8   : > { %v595_v9 = vsel %vm594_vm15, %v569_v3, %v565_v5 }
 0x3b9   : > { %v546_v0 = vpop.permute.xlu1 %545 }
 0x3ba   : > { %v573_v4 = vrot.slane %v546_v0, %v927_v21 }
 0x3bc   : > { %v597_v10 = vsel %vm596_vm0, %v573_v4, %v595_v9 }
 0x3bd   : > { %v549_v2 = vpop.permute.xlu1 %548  ;;  %v552_v6 = vpop.permute.xlu0 %551 }
 0x3be   : > { %v577_v7 = vrot.slane %v549_v2, %v927_v21  ;;  %v581_v11 = vrot.slane %v552_v6, %v927_v21 }
 0x3c0   : > { %v599_v12 = vsel %vm598_vm1, %v577_v7, %v597_v10 }
 0x3c1   : > { %v555_v8 = vpop.permute.xlu1 %554  ;;  %v601_v16 = vsel %vm600_vm4, %v581_v11, %v599_v12 }
 0x3c2   : > { %v585_v13 = vrot.slane %v555_v8, %v927_v21 }
 0x3c4   : > { %v603_v18 = vsel %vm602_vm5, %v585_v13, %v601_v16 }
 0x3c9   : > { %v561_v14 = vpop.permute.xlu1 %560 }
 0x3ca   : > { %v593_v19 = vrot.slane %v561_v14, %v927_v21 }
 0x3cc   : > { %v558_v15 = vpop.permute.xlu0 %557 }
 0x3cd   : > { %v589_v17 = vrot.slane %v558_v15, %v927_v21 }
 0x3cf   : > { %v605_v22 = vsel %vm604_vm6, %v589_v17, %v603_v18 }
 0x3d0   : > { %v607_v23 = vsel %vm606_vm7, %v593_v19, %v605_v22 }
 0x3d1   : > { %v609_v24 = vsel %vm218_vm2, %v607_v23, 0.0 }
 0x3d2   : > { %610 = vst [vmem:[%s134_s14] sm:$0xff] %v609_v24 }
 0x3d3   : > { %780 = shalt.err (!%p777_p3)
}
 0x3d4   : > { %s781_s27 = scalar_lea.hbm %s1009_s22, 128  ;;  %s785_s30 = scalar_lea.hbm %s1056_s2, 256 }
 0x3d5   : > { %p782_p4 = scmp.ne.s32.totalorder %s1009_s22, %s781_s27  ;;  %p786_p9 = scmp.lt.u32.totalorder %s1009_s22, %s1056_s2 }
 0x3d6   : > { %p787_p10 = scmp.lt.u32.totalorder %s785_s30, %s781_s27  ;;  %p789_p12 = scmp.lt.u32.totalorder %s781_s27, %s1009_s22 }
 0x3d7   : > { %p783_p7 = pnand %p782_p4, %p890_p5 }
 0x3d8   : > { %p788_p11 = por %p787_p10, %p786_p9 }
 0x3d9   : > { %p784_p8 = pneg %p783_p7 }
 0x3da   : > { %p790_p13 = por %p789_p12, %p788_p11 }
 0x3dc   : > { %p791_p0 = pnand %p790_p13, %p784_p8 }
 0x3de   : > { %794 = shalt.err (!%p791_p0)
}
 0x3df   : > { %717 = dma.vmem_to_hbm [thread:$0]  (%p890_p5), %s1011_s16, 128, %s1009_s22, %s612_s13  }
 0x3e0 PF: > { %p723_p1 = scmp.ge.s32.totalorder %s829_s12, 2  ;;  %s637_s5 = sand.u32 1, %s817_s9  }
 0x3e1   : > { %s638_s6 = scalar_lea.sflag [#allocation3], %s637_s5 }
 0x3e2   : > { %p720_p2 = pnand %p723_p1, %p894_p6 }
 0x3e4   : > { %812 = dma.done.wait (!%p720_p2), %s638_s6, 128  }
 0x3e5   : > { %814 = vsyncadd (!%p720_p2), %s638_s6, 4294967168  ;;  %p12_p3 = scmp.ge.s32.totalorder %s877_s15, 4   ;;  %s1063_s9 = smov %s821_s10 }
 0x3e6   : > { %s1064_s10 = smov %s825_s11  ;;  %s1065_s11 = smov %s888_s18 }
 0x3e7   : > { %s1066_s12 = smov %s877_s15  ;;  %14 = sbr.rel (!%p12_p3) target bundleno = 3 (0x3), region = 63 }
 0x3ee   :  { %643 = vsyncpa [#allocation3], 1 }
 0x3ef   :  { %645 = vsyncpa [#allocation3 + $0x1], 1 }

</bundles_post_ra>
